<compile_context>
chip_gen: v7x
topology: tpu7x:2x2x1
jax: 0.10.0
libtpu: 0.0.40
codegen_flags: <defaults>
</compile_context>

<pallas_src>
import functools

import jax
import jax.numpy as jnp
from jax.experimental import pallas as pl
from jax.experimental.pallas import tpu as pltpu


# ------------------------------ small helpers ------------------------------

_ROLL_SIGN_CACHE = []


def _roll_sign():
    """Return sign s.t. pltpu.roll(x, (sign*s) % N, axis=-1)[n] == x[n + s].

    Determined once with a tiny probe kernel so the conv tap indexing does not
    depend on the roll direction convention of the installed jax version.
    """
    if not _ROLL_SIGN_CACHE:
        def probe_kernel(x_ref, o_ref):
            o_ref[...] = pltpu.roll(x_ref[...], 1, axis=1)

        x = jnp.tile(jnp.arange(128, dtype=jnp.float32)[None, :], (8, 1))
        out = pl.pallas_call(
            probe_kernel,
            out_shape=jax.ShapeDtypeStruct((8, 128), jnp.float32),
        )(x)
        # jnp.roll semantics: out[1] == in[0] == 0  -> need shift = -s
        _ROLL_SIGN_CACHE.append(-1 if float(out[0, 1]) == 0.0 else 1)
    return _ROLL_SIGN_CACHE[0]


def _make_tap_masks(H, W):
    """(9, 1, H*W) per-tap validity mask implementing "same" zero padding."""
    n = jnp.arange(H * W)
    yy = n // W
    xx = n % W
    rows = []
    for ky in range(3):
        for kx in range(3):
            dy, dx = ky - 1, kx - 1
            ok = ((yy + dy >= 0) & (yy + dy < H) &
                  (xx + dx >= 0) & (xx + dx < W))
            rows.append(ok.astype(jnp.float32))
    return jnp.stack(rows, axis=0)[:, None, :]


# --------------------------------- kernel ----------------------------------

def convlstm_fused_kernel(*refs, layer_specs, W, roll_sign):
    """All ConvLSTM layers over the full sequence for ONE batch element.

    layer_specs: tuple of (Cx, Ch) per layer (input / hidden channel counts).
    Ref order:
      inputs : x (1,T,Cx0,Nc), mask (9,1,Nc),
               [wx_l (4*GP,9*Cx) bf16, wh_l (4*GP,9*Ch) bf16, bg_l (4*GP,1)] / layer,
               wl (Cy, Ch_last)
      outputs: yseq (1,Cy,T*Nc), hfin (1,Ch_last,Nc), cfin (1,Ch_last,Nc)
      scratch: hbuf_l (T,Ch_l,Nc) per layer, pre_scr (T,GPR,Nc),
               icol_scr (9*Cmax,Nc), hc_l (2*Ch_l,Nc) per layer
    """
    L = len(layer_specs)
    it = iter(refs)
    x_ref = next(it)
    mask_ref = next(it)
    w_refs = [(next(it), next(it), next(it)) for _ in range(L)]
    wl_ref = next(it)
    yseq_ref = next(it)
    hfin_ref = next(it)
    cfin_ref = next(it)
    hbufs = [next(it) for _ in range(L)]
    pre_scr = next(it)
    icol_scr = next(it)
    carries = [next(it) for _ in range(L)]

    T = x_ref.shape[1]
    Nc = x_ref.shape[3]

    # Tap k = ky*3 + kx  <->  source offset (dy, dx) = (ky-1, kx-1).  A lane
    # roll of the flattened (y, x) axis makes lane n read the value at spatial
    # offset (dy, dx); mask[k] zeroes lanes whose source falls outside the
    # image (this also kills the row / image wrap-around of the roll).
    shifts = [(roll_sign * ((ky - 1) * W + (kx - 1))) % Nc
              for ky in range(3) for kx in range(3)]
    masks = [mask_ref[k] for k in range(9)]          # each (1, Nc), f32

    def build_im2col(v, C):
        """v: (C, Nc) f32 -> (9*C, Nc) bf16 tap-major im2col block."""
        for k in range(9):
            piece = v if k == 4 else pltpu.roll(v, shifts[k], axis=1) * masks[k]
            icol_scr[k * C:(k + 1) * C] = piece      # static sublane slices
        return icol_scr[0:9 * C].astype(jnp.bfloat16)

    for l in range(L):
        Cx, Ch = layer_specs[l]
        is_last = (l == L - 1)
        wx_ref, wh_ref, bg_ref = w_refs[l]
        hbuf = hbufs[l]
        hc_ref = carries[l]

        # hoist loop-invariant weight loads / broadcasts
        wx = wx_ref[...]                             # (4*GP, 9*Cx) bf16
        wh = wh_ref[...]                             # (4*GP, 9*Ch) bf16
        bg = bg_ref[...]                             # (4*GP, 1)    f32
        gp4 = bg.shape[0]
        gp = gp4 // 4                                # per-gate row pitch
        bias_bc = jnp.broadcast_to(bg, (gp4, Nc))    # hoisted bias broadcast

        # ---- phase 1: input-path gate pre-activations for ALL timesteps ----
        # (the layer input is fully available before the recurrence, so this
        #  is off the serial critical path; bias is folded in here)
        for t in range(T):
            xs = x_ref[0, t] if l == 0 else hbufs[l - 1][t]     # (Cx, Nc) f32
            blk = build_im2col(xs, Cx)                          # (9*Cx, Nc) bf16
            pre = jnp.dot(wx, blk, preferred_element_type=jnp.float32)
            pre_scr[t, 0:gp4] = pre + bias_bc

        # ---- phase 2: recurrent loop (h path only) ----
        hc_ref[...] = jnp.zeros(hc_ref.shape, hc_ref.dtype)

        def step(t, carry):
            hc = hc_ref[...]                         # (2*Ch, Nc)
            h_c = hc[0:Ch]
            c_c = hc[Ch:2 * Ch]

            blk = build_im2col(h_c, Ch)              # (9*Ch, Nc) bf16
            acc = pre_scr[t][0:gp4] + jnp.dot(
                wh, blk, preferred_element_type=jnp.float32)    # (4*GP, Nc) f32

            # bulk sigmoid over the i/f/o rows (padded rows are harmless);
            # tanh form keeps the transcendental on the EUP and avoids inf.
            sig = 0.5 * jnp.tanh(0.5 * acc[0:3 * gp]) + 0.5
            i_g = sig[0:Ch]
            f_g = sig[gp:gp + Ch]
            o_g = sig[2 * gp:2 * gp + Ch]
            g_g = jnp.tanh(acc[3 * gp:3 * gp + Ch])

            c_n = f_g * c_c + i_g * g_g
            h_n = o_g * jnp.tanh(c_n)

            hc_ref[0:Ch] = h_n
            hc_ref[Ch:2 * Ch] = c_n
            hbuf[t] = h_n
            return carry

        jax.lax.fori_loop(0, T, step, 0, unroll=2)

        if is_last:
            # conv_last: 1x1 conv (no bias) on every h of the last layer,
            # done after the recurrence so it never sits on the serial path.
            wl = wl_ref[...]                         # (Cy, Ch)
            for t in range(T):
                y = jnp.dot(wl, hbuf[t], preferred_element_type=jnp.float32)
                yseq_ref[0, :, t * Nc:(t + 1) * Nc] = y
            hc = hc_ref[...]
            hfin_ref[0] = hc[0:Ch]
            cfin_ref[0] = hc[Ch:2 * Ch]


# ----------------------------- pallas_call wrap -----------------------------

def convlstm_fused(x_btcn, mask, wx_list, wh_list, bg_list, wl, layer_specs, H, W):
    """x_btcn: (B, T, Cx0, Nc).  Returns (yseq (B,Cy,T*Nc), hfin, cfin)."""
    B, T, _, Nc = x_btcn.shape
    L = len(layer_specs)
    ch_last = layer_specs[-1][1]
    cy = wl.shape[0]
    gpr = max(bg.shape[0] for bg in bg_list)
    cmax = max(max(cx, ch) for cx, ch in layer_specs)

    inputs = [x_btcn, mask]
    for wx, wh, bg in zip(wx_list, wh_list, bg_list):
        inputs += [wx, wh, bg]
    inputs.append(wl)

    def batch_spec(shape):
        nd = len(shape)
        return pl.BlockSpec((1,) + tuple(shape[1:]),
                            lambda b, _nd=nd: (b,) + (0,) * (_nd - 1))

    def const_spec(shape):
        nd = len(shape)
        return pl.BlockSpec(tuple(shape), lambda b, _nd=nd: (0,) * _nd)

    in_specs = [batch_spec(x_btcn.shape), const_spec(mask.shape)]
    for wx, wh, bg in zip(wx_list, wh_list, bg_list):
        in_specs += [const_spec(wx.shape), const_spec(wh.shape),
                     const_spec(bg.shape)]
    in_specs.append(const_spec(wl.shape))

    out_shape = (
        jax.ShapeDtypeStruct((B, cy, T * Nc), jnp.float32),   # conv_last(h_t)
        jax.ShapeDtypeStruct((B, ch_last, Nc), jnp.float32),  # final h
        jax.ShapeDtypeStruct((B, ch_last, Nc), jnp.float32),  # final c
    )
    out_specs = [batch_spec(s.shape) for s in out_shape]

    scratch = [pltpu.VMEM((T, layer_specs[l][1], Nc), jnp.float32)
               for l in range(L)]                              # h sequences
    scratch.append(pltpu.VMEM((T, gpr, Nc), jnp.float32))      # x-path pre-acts
    scratch.append(pltpu.VMEM((9 * cmax, Nc), jnp.float32))    # im2col staging
    for _, ch in layer_specs:                                  # packed (h, c)
        scratch.append(pltpu.VMEM((2 * ch, Nc), jnp.float32))

    kernel = functools.partial(
        convlstm_fused_kernel,
        layer_specs=tuple(layer_specs), W=W, roll_sign=_roll_sign())

    grid_spec = pltpu.PrefetchScalarGridSpec(
        num_scalar_prefetch=0,
        grid=(B,),
        in_specs=in_specs,
        out_specs=out_specs,
        scratch_shapes=scratch,
    )
    return pl.pallas_call(
        kernel,
        out_shape=out_shape,
        grid_spec=grid_spec,
        compiler_params=pltpu.CompilerParams(
            dimension_semantics=("parallel",),     # v7x: one batch per core
            vmem_limit_bytes=32 * 1024 * 1024,     # well under v7x's 64 MiB
        ),
    )(*inputs)


def convlstm_forward(x_btchw, params_k):
    """x: (B, T, C, H, W) -- same as the PyTorch module.
    Returns (layer_output, last_state_list):
      layer_output: (B, T, C, H, W)   conv_last applied to each h of last layer
      last_state_list: [(h, c)] with h, c of shape (B, hidden, H, W)."""
    B, T, C, H, W = x_btchw.shape
    Nc = H * W
    x_btcn = x_btchw.reshape(B, T, C, Nc).astype(jnp.float32)
    mask = _make_tap_masks(H, W)

    yseq, hfin, cfin = convlstm_fused(
        x_btcn, mask,
        params_k["gate_wx_k"], params_k["gate_wh_k"], params_k["gate_b_k"],
        params_k["last_w_k"], params_k["layer_specs"], H, W)

    cy = params_k["last_w_k"].shape[0]
    ch = params_k["layer_specs"][-1][1]
    layer_output = jnp.transpose(yseq.reshape(B, cy, T, H, W), (0, 2, 1, 3, 4))
    h_out = hfin.reshape(B, ch, H, W)
    c_out = cfin.reshape(B, ch, H, W)
    return layer_output, [(h_out, c_out)]


# --------------- parameter construction (deterministic, synthetic) ----------------

def init_params(key, input_dim, hidden_dims, kernel_size=(3, 3)):
    """PyTorch-layout parameters: gate conv OIHW + bias, conv_last OIHW (no bias)."""
    gate_w, gate_b = [], []
    for li, hid in enumerate(hidden_dims):
        cur_in = input_dim if li == 0 else hidden_dims[li - 1]
        cin = cur_in + hid
        key, k1, k2 = jax.random.split(key, 3)
        gate_w.append(0.1 * jax.random.normal(
            k1, (4 * hid, cin, kernel_size[0], kernel_size[1]), jnp.float32))
        gate_b.append(0.1 * jax.random.normal(k2, (4 * hid,), jnp.float32))
    key, k3 = jax.random.split(key)
    last_w = 0.1 * jax.random.normal(
        k3, (input_dim, hidden_dims[-1], 1, 1), jnp.float32)
    return {"gate_w": gate_w, "gate_b": gate_b, "last_w": last_w}


def params_to_kernel_layout(p, input_dim, hidden_dims):
    """PyTorch OIHW weights -> tap-major im2col, gate-row-padded, bf16 layout."""
    wx_list, wh_list, bg_list, specs = [], [], [], []
    for li, hid in enumerate(hidden_dims):
        cx = input_dim if li == 0 else hidden_dims[li - 1]
        cin = cx + hid
        gp = -(-hid // 8) * 8                          # pad each gate to 8-row pitch
        w = p["gate_w"][li]                            # (4*hid, cin, 3, 3) OIHW
        w = w.reshape(4, hid, cin, 3, 3)
        w = jnp.pad(w, ((0, 0), (0, gp - hid), (0, 0), (0, 0), (0, 0)))
        w = w.reshape(4 * gp, cin, 3, 3)
        w = jnp.transpose(w, (0, 2, 3, 1))             # (4*gp, ky, kx, cin)
        wx = w[:, :, :, :cx].reshape(4 * gp, 9 * cx)   # column = k*cx + c
        wh = w[:, :, :, cx:].reshape(4 * gp, 9 * hid)  # column = k*hid + c
        wx_list.append(wx.astype(jnp.bfloat16))
        wh_list.append(wh.astype(jnp.bfloat16))
        b = p["gate_b"][li].reshape(4, hid)
        b = jnp.pad(b, ((0, 0), (0, gp - hid))).reshape(4 * gp, 1)
        bg_list.append(b)
        specs.append((cx, hid))
    return {
        "gate_wx_k": wx_list,
        "gate_wh_k": wh_list,
        "gate_b_k": bg_list,
        "last_w_k": p["last_w"][:, :, 0, 0],           # (C_out, Ch_last)
        "layer_specs": tuple(specs),
    }


# ---------------- pure-JAX reference (mirrors the PyTorch forward) ----------------

def ref_forward(x, p, hidden_dims):
    B, T, C, H, W = x.shape
    hp = jax.lax.Precision.HIGHEST
    cur = x.astype(jnp.float32)
    wl = p["last_w"][:, :, 0, 0]   # (C_out, Ch)
    out = last = None
    for li, hid in enumerate(hidden_dims):
        w, b = p["gate_w"][li], p["gate_b"][li]
        h = jnp.zeros((B, hid, H, W), jnp.float32)
        c = jnp.zeros((B, hid, H, W), jnp.float32)
        hs, ys = [], []
        for t in range(T):
            comb = jnp.concatenate([cur[:, t], h], axis=1)
            conv = jax.lax.conv_general_dilated(
                comb, w, window_strides=(1, 1), padding=((1, 1), (1, 1)),
                dimension_numbers=("NCHW", "OIHW", "NCHW"),
                precision=hp) + b[None, :, None, None]
            i = jax.nn.sigmoid(conv[:, :hid])
            f = jax.nn.sigmoid(conv[:, hid:2 * hid])
            o = jax.nn.sigmoid(conv[:, 2 * hid:3 * hid])
            g = jnp.tanh(conv[:, 3 * hid:])
            c = f * c + i * g
            h = o * jnp.tanh(c)
            hs.append(h)
            ys.append(jnp.einsum("bchw,oc->bohw", h, wl, precision=hp))
        cur = jnp.stack(hs, axis=1)
        out = jnp.stack(ys, axis=1)
        last = (h, c)
    return out, [last]


if __name__ == "__main__":
    # small shapes consistent with the module (input_dim=1, hidden=[4,4,4], 3x3 kernel)
    B, T, C, H, W = 2, 8, 1, 16, 16
    hidden_dims = [4, 4, 4]

    key = jax.random.PRNGKey(0)
    kx, kp = jax.random.split(key)
    x = jax.random.normal(kx, (B, T, C, H, W), jnp.float32)
    p = init_params(kp, C, hidden_dims)
    pk = params_to_kernel_layout(p, C, hidden_dims)

    layer_output, last_states = convlstm_forward(x, pk)
    layer_output = jax.block_until_ready(layer_output)
    h_last = jax.block_until_ready(last_states[0][0])
    c_last = jax.block_until_ready(last_states[0][1])

    # verify against a pure-JAX reference of the PyTorch forward; the tolerance
    # leaves headroom for the bf16-operand / f32-accumulate MXU matmuls.
    out_ref, last_ref = ref_forward(x, p, hidden_dims)
    assert layer_output.shape == (B, T, C, H, W)
    assert h_last.shape == (B, hidden_dims[-1], H, W)
    assert jnp.allclose(layer_output, out_ref, atol=2e-2, rtol=2e-2)
    assert jnp.allclose(h_last, last_ref[0][0], atol=2e-2, rtol=2e-2)
    assert jnp.allclose(c_last, last_ref[0][1], atol=2e-2, rtol=2e-2)

    print("KERNEL_OK")
</pallas_src>

<mosaic_0001>
module attributes {stable_mosaic.version = 11 : i64} {
  func.func @probe_kernel(%arg0: memref<8x128xf32, #tpu.memory_space<vmem>>, %arg1: memref<8x128xf32, #tpu.memory_space<vmem>>) attributes {dimension_semantics = [], scalar_prefetch = 0 : i64, scratch_operands = 0 : i64, tpu.core_type = #tpu.core_type<tc>} {
    %c0 = arith.constant 0 : index
    %c0_0 = arith.constant 0 : index
    %0 = vector.load %arg0[%c0, %c0_0] : memref<8x128xf32, #tpu.memory_space<vmem>>, vector<8x128xf32>
    %c1_i32 = arith.constant 1 : i32
    %1 = tpu.dynamic_rotate %0 by %c1_i32 dim 1 : vector<8x128xf32>, i32 -> vector<8x128xf32>
    %c0_1 = arith.constant 0 : index
    %c0_2 = arith.constant 0 : index
    %2 = vector.load %arg1[%c0_1, %c0_2] : memref<8x128xf32, #tpu.memory_space<vmem>>, vector<8x128xf32>
    tpu.vector_store %arg1[%c0_1, %c0_2], %1 {strides = array<i32>} : memref<8x128xf32, #tpu.memory_space<vmem>>, vector<8x128xf32>,
    return
  }
}

</mosaic_0001>

<bundles_post_ra>
// kernel: tpu_custom_call.1
= control target key start
LH: loop header
LB: loop body
LE: loop exit
PB: predicated region body
PF: predicated region fallthrough
CT: control target
= control target key end

     0   :  { %6 = vsyncpa [#allocation3], 0  ;;  %s128_s0 = inlined_call_operand.hbm [shape: f32[8,128], index: 0, kind: input, shape index: {}]   ;;  %s129_s1 = inlined_call_operand.hbm [shape: f32[8,128], index: 1, kind: output, shape index: {}]  }
   0x1   :  { %7 = vsyncpa [#allocation4], 0  ;;  %s91_s6 = smov [#allocation2]   ;;  %s43_s10 = scalar_lea.hbm %s128_s0, 128 }
   0x2   :  { %s14_s7 = sshll.u32 %s91_s6, 4  ;;  %p44_p0 = scmp.ne.s32.totalorder %s128_s0, %s43_s10  ;;  %s15_s7 = int_to_ptr.vmem [resolvable:$true] %s14_s7 }
   0x3   :  { %p47_p1 = scmp.lt.u32.totalorder %s43_s10, %s128_s0 }
   0x5   :  { %p49_p2 = pnand %p47_p1, %p44_p0 }
   0x7   :  { %52 = shalt.err (!%p49_p2)
}
   0x8   :  { %s53_s15 = scalar_lea.vmem %s15_s7, 128  ;;  %p58_p4 = scmp.lt.s32.totalorder %s15_s7, %s15_s7 }
   0x9   :  { %p54_p3 = scmp.ne.s32.totalorder %s15_s7, %s53_s15  ;;  %p59_p5 = scmp.lt.s32.totalorder %s53_s15, %s53_s15 }
   0xb   :  { %p60_p6 = por %p59_p5, %p58_p4 }
   0xd   :  { %p61_p7 = pnand %p60_p6, %p54_p3 }
   0xf   :  { %64 = shalt.err (!%p61_p7)
}
  0x10   :  { %17 = dma.hbm_to_vmem [thread:$0]  %s128_s0, 128, %s15_s7, [#allocation3]  }
  0x11   :  { %87 = dma.done.wait [#allocation3], 128  }
  0x12   :  { %88 = vsyncadd [#allocation3], 4294967168  ;;  %v21_v0 = vld [vmem:[#allocation2] sm:$0xff]  ;;  %s92_s18 = smov 1   ;;  %s93_s19 = smov [#allocation5]  }
  0x13   :  { %22 = vrot.lane.b32.xlu0 %v21_v0, %s92_s18  ;;  %s31_s20 = sshll.u32 %s93_s19, 4  ;;  %s32_s20 = int_to_ptr.vmem [resolvable:$true] %s31_s20 }
  0x14   :  { %s65_s21 = scalar_lea.vmem %s32_s20, 128  ;;  %p70_p9 = scmp.lt.s32.totalorder %s32_s20, %s32_s20 }
  0x15   :  { %p66_p8 = scmp.ne.s32.totalorder %s32_s20, %s65_s21  ;;  %p71_p10 = scmp.lt.s32.totalorder %s65_s21, %s65_s21 }
  0x17   :  { %p72_p11 = por %p71_p10, %p70_p9 }
  0x19   :  { %p73_p12 = pnand %p72_p11, %p66_p8 }
  0x85   :  { %v23_v1 = vpop.permute.xlu0 %22 }
  0x86   :  { %24 = vst [vmem:[#allocation5] sm:$0xff] %v23_v1 }
  0x87   :  { %76 = shalt.err (!%p73_p12)
}
  0x88   :  { %s77_s0 = scalar_lea.hbm %s129_s1, 128 }
  0x89   :  { %p78_p13 = scmp.ne.s32.totalorder %s129_s1, %s77_s0  ;;  %p81_p0 = scmp.lt.u32.totalorder %s77_s0, %s129_s1 }
  0x8b   :  { %p83_p1 = pnand %p81_p0, %p78_p13 }
  0x8d   :  { %86 = shalt.err (!%p83_p1)
}
  0x8e   :  { %34 = dma.vmem_to_hbm [thread:$0]  %s32_s20, 128, %s129_s1, [#allocation4]  }
  0x8f   :  { %89 = dma.done.wait [#allocation4], 128  }
  0x90   :  { %90 = vsyncadd [#allocation4], 4294967168 }
  0x91   :  { %38 = vsyncpa [#allocation3], 1 }
  0x92   :  { %39 = vsyncpa [#allocation4], 1 }

</bundles_post_ra>
